<compile_context>
chip_gen: v6e
topology: v6e:2x2x1
jax: 0.10.0
libtpu: 0.0.40
codegen_flags: <defaults>
</compile_context>

<pallas_src>
import math

import jax
import jax.numpy as jnp
from jax.experimental import pallas as pl
from jax.experimental.pallas import tpu as pltpu


def _view_copy_kernel(x_ref, o_ref):
    # Straight copy of one (tile, lane) block through VMEM.
    o_ref[...] = x_ref[...]


_LANE_CANDIDATES = (1024, 512, 256, 128)       # multiples of the 128-lane vreg
_BLOCK_BYTE_BUDGET = 4 * 1024 * 1024           # per buffer; 4 bufs (in+out, dbl-buffered) = 16 MiB
_VMEM_LIMIT_BYTES = 32 * 1024 * 1024           # explicit scoped-VMEM limit; safe on v5e/v6e/v7x


def _resolve_shape(b, total, shape):
    """Resolve a torch-style view shape (including a single -1) and validate it."""
    shape = tuple(int(s) for s in shape)
    rest = total // b
    if -1 in shape:
        known = 1
        for s in shape:
            if s != -1:
                known *= s
        if known == 0 or rest % known != 0 or shape.count(-1) != 1:
            raise ValueError(f"View shape {shape} incompatible with input of {total} elements")
        shape = tuple(rest // known if s == -1 else s for s in shape)
    if b * math.prod(shape) != total:
        raise ValueError(f"View shape {shape} incompatible with input of {total} elements")
    return shape


def _choose_row_tile(rows, lane, itemsize, sub, budget=_BLOCK_BYTE_BUDGET):
    """Largest sublane-aligned row tile within the byte budget, preferring >=2 blocks."""
    row_bytes = lane * itemsize
    max_tile = max(sub, (budget // row_bytes) // sub * sub)
    cap = min(max_tile, rows)
    if rows >= 2 * sub:
        # Leave room for at least 2 grid blocks so both v7x TensorCores get work.
        cap = min(cap, max(sub, (rows // 2) // sub * sub))
    best = None
    t = sub
    while t <= cap:
        if rows % t == 0:
            best = t
        t += sub
    if best is not None:
        return best
    # No sublane-aligned exact divisor: full-extent block if it fits the budget
    # (always legal), otherwise a fixed aligned tile with a masked ragged last block.
    if rows <= max_tile:
        return rows
    return max_tile


def _fallback_batch_tile(b, rest, itemsize, budget=_BLOCK_BYTE_BUDGET):
    """Batch tile for the (batch, rest) fallback layout (last dim kept full-extent)."""
    if b <= 8:
        return b                                   # single full-extent block
    row_bytes = max(1, rest * itemsize)
    max_tile = max(8, (budget // row_bytes) // 8 * 8)
    tile = min(max_tile, max(8, (b // 2) // 8 * 8))   # >= 2 blocks when possible
    return max(8, tile)


def pallas_view(x, *shape):
    """Equivalent of View(*shape)(x) == x.view(x.shape[0], *shape)."""
    b = x.shape[0]
    total = x.size
    itemsize = jnp.dtype(x.dtype).itemsize
    out_shape_tuple = (b,) + _resolve_shape(b, total, shape)

    sub = max(1, 32 // itemsize)                   # packed sublanes: 8 f32 / 16 bf16 / 32 int8

    # --- pick a lane-dense 2D slab (rows, lane), lane % 128 == 0 -----------
    lane = None
    for cand in _LANE_CANDIDATES:                  # prefer lanes leaving >= sub sublanes
        if total % cand == 0 and total // cand >= sub:
            lane = cand
            break
    if lane is None:
        for cand in _LANE_CANDIDATES:
            if total % cand == 0:
                lane = cand
                break

    if lane is not None:
        rows = total // lane
        tile = _choose_row_tile(rows, lane, itemsize, sub)
        slab = x.reshape(rows, lane)               # metadata-only
        slab_shape = (rows, lane)
        block = (tile, lane)
        grid = (pl.cdiv(rows, tile),)
    else:
        # Awkward total (not a multiple of 128): keep the natural (batch, rest)
        # layout with a full-extent last dim. No padding, no extra HBM passes.
        rest = total // b
        tile = _fallback_batch_tile(b, rest, itemsize)
        slab = x.reshape(b, rest)                  # metadata-only
        slab_shape = (b, rest)
        block = (tile, rest)
        grid = (pl.cdiv(b, tile),)

    out_slab = pl.pallas_call(
        _view_copy_kernel,
        out_shape=jax.ShapeDtypeStruct(slab_shape, x.dtype),
        grid_spec=pl.GridSpec(
            grid=grid,
            in_specs=[pl.BlockSpec(block, lambda i: (i, 0))],
            out_specs=pl.BlockSpec(block, lambda i: (i, 0)),
        ),
        compiler_params=pltpu.CompilerParams(
            dimension_semantics=("parallel",),
            vmem_limit_bytes=_VMEM_LIMIT_BYTES,
        ),
        # Bit-exact copy -> aliasing is always safe; buffer elision only kicks in
        # when the caller donates x (e.g. jax.jit(..., donate_argnums=0)).
        input_output_aliases={0: 0},
    )(slab)

    return out_slab.reshape(out_shape_tuple)       # metadata-only: restore target shape


if __name__ == "__main__":
    key = jax.random.PRNGKey(0)
    k1, k2, k3 = jax.random.split(key, 3)

    # 1) Spec shape: View(C*H*W) on an NCHW batch, exactly like
    #    x.view(x.shape[0], C*H*W) in the PyTorch module.
    B, C, H, W = 2, 4, 16, 16
    x = jax.random.normal(k1, (B, C, H, W), dtype=jnp.float32)
    y = jax.block_until_ready(pallas_view(x, C * H * W))
    ref = x.reshape(B, C * H * W)
    assert y.shape == (B, C * H * W)
    assert y.dtype == x.dtype
    assert bool(jnp.all(y == ref))

    # 1b) torch-style -1 in the view shape.
    y_neg = jax.block_until_ready(pallas_view(x, -1))
    assert y_neg.shape == (B, C * H * W)
    assert bool(jnp.all(y_neg == ref))

    # 2) Larger input: multi-block software-pipelined path (grid >= 2 so both
    #    v7x TensorCores get work; ~2 MiB blocks within the byte budget).
    B2, C2, H2, W2 = 16, 64, 32, 32
    x2 = jax.random.normal(k2, (B2, C2, H2, W2), dtype=jnp.float32)
    y2 = jax.block_until_ready(pallas_view(x2, C2 * H2 * W2))
    assert y2.shape == (B2, C2 * H2 * W2)
    assert bool(jnp.all(y2 == x2.reshape(B2, C2 * H2 * W2)))

    # 3) Awkward total (not a multiple of 128): exercises the pad-free
    #    (batch, rest) fallback with a full-extent last dim.
    B3, C3, H3, W3 = 2, 3, 5, 7
    x3 = jax.random.normal(k3, (B3, C3, H3, W3), dtype=jnp.float32)
    y3 = jax.block_until_ready(pallas_view(x3, C3 * H3 * W3))
    assert y3.shape == (B3, C3 * H3 * W3)
    assert bool(jnp.all(y3 == x3.reshape(B3, C3 * H3 * W3)))

    print("KERNEL_OK")
</pallas_src>

<mosaic_0001>
module attributes {stable_mosaic.version = 11 : i64} {
  func.func @_view_copy_kernel(%arg0: i32, %arg1: memref<8x256xf32, #tpu.memory_space<vmem>>, %arg2: memref<8x256xf32, #tpu.memory_space<vmem>>) attributes {dimension_semantics = [#tpu.dimension_semantics<parallel>], iteration_bounds = array<i64: 1>, scalar_prefetch = 0 : i64, scratch_operands = 0 : i64, tpu.core_type = #tpu.core_type<tc>, window_params = [{transform_indices = @transform_0, window_bounds = array<i64: 8, 256>}, {transform_indices = @transform_1, window_bounds = array<i64: 8, 256>}]} {
    %c0 = arith.constant 0 : index
    %c0_0 = arith.constant 0 : index
    %0 = vector.load %arg1[%c0, %c0_0] : memref<8x256xf32, #tpu.memory_space<vmem>>, vector<8x256xf32>
    %c0_1 = arith.constant 0 : index
    %c0_2 = arith.constant 0 : index
    %1 = vector.load %arg2[%c0_1, %c0_2] : memref<8x256xf32, #tpu.memory_space<vmem>>, vector<8x256xf32>
    tpu.vector_store %arg2[%c0_1, %c0_2], %0 {strides = array<i32>} : memref<8x256xf32, #tpu.memory_space<vmem>>, vector<8x256xf32>,
    return
  }
  func.func @transform_0(%arg0: i32) -> (i32, i32) {
    %c0_i32 = arith.constant 0 : i32
    %c0_i32_0 = arith.constant 0 : i32
    return %arg0, %c0_i32 : i32, i32
  }
  func.func @transform_1(%arg0: i32) -> (i32, i32) {
    %c0_i32 = arith.constant 0 : i32
    %c0_i32_0 = arith.constant 0 : i32
    return %arg0, %c0_i32 : i32, i32
  }
}

</mosaic_0001>

<bundles_post_ra>
// kernel: tpu_custom_call.1
= control target key start
LH: loop header
LB: loop body
LE: loop exit
PB: predicated region body
PF: predicated region fallthrough
CT: control target
= control target key end

     0   :  { %6 = vsyncpa [#allocation3], 0  ;;  %s104_s0 = inlined_call_operand.hbm [shape: f32[8,256], index: 0, kind: input, shape index: {}, may-alias: {0,1}]   ;;  %s105_s1 = inlined_call_operand.hbm [shape: f32[8,256], index: 1, kind: output, shape index: {}, may-alias: {0,1}]  }
   0x1   :  { %7 = vsyncpa [#allocation4], 0  ;;  %s86_s6 = smov [#allocation2]  }
   0x2   :  { %s14_s7 = sshll.u32 %s86_s6, 4  ;;  %s15_s7 = int_to_ptr.vmem [resolvable:$true] %s14_s7 }
   0x3   :  { %s50_s8 = scalar_lea.vmem %s15_s7, 256  ;;  %p55_p1 = scmp.lt.s32.totalorder %s15_s7, %s15_s7 }
   0x4   :  { %p51_p0 = scmp.ne.s32.totalorder %s15_s7, %s50_s8  ;;  %p56_p2 = scmp.lt.s32.totalorder %s50_s8, %s50_s8 }
   0x6   :  { %p57_p3 = por %p56_p2, %p55_p1 }
   0x8   :  { %p58_p4 = pnand %p57_p3, %p51_p0 }
   0xa   :  { %61 = shalt.err (!%p58_p4)
}
   0xb   :  { %17 = dma.hbm_to_vmem [thread:$0]  %s104_s0, 256, %s15_s7, [#allocation3]  }
   0xc   :  { %82 = dma.done.wait [#allocation3], 256  }
   0xd   :  { %83 = vsyncadd [#allocation3], 4294967040  ;;  %s87_s11 = smov [#allocation5]   ;;  %v21_v0 = vld [vmem:[#allocation2] sm:$0xff]  ;;  %v22_v1 = vld [vmem:[#allocation2 + $0x8] sm:$0xff] }
   0xe   :  { %s31_s12 = sshll.u32 %s87_s11, 4  ;;  %23 = vst [vmem:[#allocation5] sm:$0xff] %v21_v0  ;;  %24 = vst [vmem:[#allocation5 + $0x8] sm:$0xff] %v22_v1  ;;  %s32_s12 = int_to_ptr.vmem [resolvable:$true] %s31_s12 }
   0xf   :  { %s62_s13 = scalar_lea.vmem %s32_s12, 256  ;;  %p67_p6 = scmp.lt.s32.totalorder %s32_s12, %s32_s12 }
  0x10   :  { %p63_p5 = scmp.ne.s32.totalorder %s32_s12, %s62_s13  ;;  %p68_p7 = scmp.lt.s32.totalorder %s62_s13, %s62_s13 }
  0x12   :  { %p69_p8 = por %p68_p7, %p67_p6 }
  0x14   :  { %p70_p9 = pnand %p69_p8, %p63_p5 }
  0x16   :  { %73 = shalt.err (!%p70_p9)
}
  0x17   :  { %34 = dma.vmem_to_hbm [thread:$0]  %s32_s12, 256, %s105_s1, [#allocation4]  }
  0x18   :  { %84 = dma.done.wait [#allocation4], 256  }
  0x19   :  { %85 = vsyncadd [#allocation4], 4294967040 }
  0x1a   :  { %38 = vsyncpa [#allocation3], 1 }
  0x1b   :  { %39 = vsyncpa [#allocation4], 1 }

</bundles_post_ra>
